<compile_context>
chip_gen: v5e
topology: v5e:2x2
jax: 0.10.0
libtpu: 0.0.40
codegen_flags: <defaults>
</compile_context>

<pallas_src>
import functools
import math

import jax
import jax.numpy as jnp
from jax import lax
from jax.experimental import pallas as pl
from jax.experimental.pallas import tpu as pltpu


def _round_up(x, m):
    return (x + m - 1) // m * m


_TK_CAP = 2048  # K tile when the K grid axis is used.


def _k_resident_max(itemsize):
    # Max in_dim kept resident per step (x / W^T tiles hold the whole K dim).
    return 8192 if itemsize <= 2 else 4096


def _linear_with_lora_kernel(x_ref, wt_ref, bias_ref, a_ref, b_ref, o_ref,
                             acc_ref, xa_ref, *, reuse_xa):
    """One (i, j, k) grid step of y = x @ W^T + bias + (x @ A) @ (alpha*B)."""
    j = pl.program_id(1)
    k = pl.program_id(2)
    nk = pl.num_programs(2)

    @pl.when(k == 0)
    def _init_acc():
        acc_ref[...] = jnp.zeros_like(acc_ref)

    x = x_ref[...]                                     # (tm, tk), compute dtype

    # Frozen linear path: W is stored pre-transposed ([in_dim, out_dim]), so
    # this is a plain NN matmul on the MXU with f32 accumulation.
    acc_ref[...] += jnp.dot(x, wt_ref[...], preferred_element_type=jnp.float32)

    # LoRA "A" projection (x @ A), accumulated over the K grid axis in f32.
    if reuse_xa:
        # Computed once per row tile (during the j == 0 sweep of k) and reused
        # for every output-column tile of that row tile.
        @pl.when(jnp.logical_and(j == 0, k == 0))
        def _init_xa():
            xa_ref[...] = jnp.zeros_like(xa_ref)

        @pl.when(j == 0)
        def _acc_xa():
            xa_ref[...] += jnp.dot(x, a_ref[...],
                                   preferred_element_type=jnp.float32)
    else:
        # Small-M / decode path: recompute the tiny x@A per output tile so the
        # N grid axis carries no cross-step state and can be megacore-parallel.
        @pl.when(k == 0)
        def _init_xa():
            xa_ref[...] = jnp.zeros_like(xa_ref)

        xa_ref[...] += jnp.dot(x, a_ref[...], preferred_element_type=jnp.float32)

    @pl.when(k == nk - 1)
    def _finalize():
        # Keep the LoRA matmul on the low-precision MXU path (alpha is already
        # folded into B in prepare), then f32 epilogue (bias add) and cast.
        xa = xa_ref[...].astype(b_ref.dtype)
        lora = jnp.dot(xa, b_ref[...], preferred_element_type=jnp.float32)
        o_ref[...] = (acc_ref[...] + bias_ref[...] + lora).astype(o_ref.dtype)


def prepare_linear_with_lora(w, bias, a, b, alpha, *, compute_dtype=jnp.bfloat16):
    """One-time packing of the frozen / LoRA parameters.

    Call once (outside the per-step jit): stores W pre-transposed as
    [in_dim, out_dim], pre-cast to the MXU compute dtype and padded to
    lane/sublane-friendly shapes, and folds alpha into B, so the hot path
    never rewrites the weights in HBM.
    """
    out_dim, in_dim = w.shape
    if compute_dtype is None:
        compute_dtype = w.dtype
    itemsize = jnp.dtype(compute_dtype).itemsize

    # Pad K only when the K grid axis will be used; pad N to a multiple of 128.
    k_p = in_dim if in_dim <= _k_resident_max(itemsize) else _round_up(in_dim, _TK_CAP)
    n_p = _round_up(out_dim, 128)

    wt = jnp.transpose(w).astype(compute_dtype)                    # [in_dim, out_dim]
    wt = jnp.pad(wt, ((0, k_p - in_dim), (0, n_p - out_dim)))
    a_p = jnp.pad(a.astype(compute_dtype), ((0, k_p - in_dim), (0, 0)))
    b_p = jnp.pad((alpha * b).astype(compute_dtype), ((0, 0), (0, n_p - out_dim)))
    bias2d = jnp.pad(bias.astype(jnp.float32), (0, n_p - out_dim)).reshape(1, n_p)
    return wt, bias2d, a_p, b_p


def linear_with_lora_apply(x, wt, bias2d, a, b, *, out_dim, tm=512, w_buffers=2):
    """Hot path: y = x @ W^T + bias + alpha * ((x @ A) @ B), prepared params."""
    lead = x.shape[:-1]
    in_dim = x.shape[-1]
    out_dtype = x.dtype
    compute_dtype = wt.dtype
    itemsize = jnp.dtype(compute_dtype).itemsize
    out_itemsize = jnp.dtype(out_dtype).itemsize

    k_p, n_p = wt.shape
    rank = a.shape[-1]

    # --- per-call work is activation-sized only ---
    xm = x.reshape(-1, in_dim).astype(compute_dtype)
    m = xm.shape[0]

    # Large, M-balanced row tile (raises W-stream arithmetic intensity without
    # a mostly-padding last tile), rounded to the dtype sublane-pack multiple.
    row_mult = max(8, 32 // itemsize)          # 8 f32 / 16 bf16 / 32 int8
    n_row_tiles = pl.cdiv(m, tm)
    tm_eff = _round_up(pl.cdiv(m, n_row_tiles), row_mult)
    m_p = n_row_tiles * tm_eff

    if (m_p, k_p) != xm.shape:
        xm = jnp.pad(xm, ((0, m_p - m), (0, k_p - in_dim)))

    tn = 256 if n_p % 256 == 0 else 128
    tk = k_p if k_p <= _k_resident_max(itemsize) else _TK_CAP

    grid = (n_row_tiles, n_p // tn, k_p // tk)
    reuse_xa = n_row_tiles > 1
    dims = ("parallel",
            "arbitrary" if reuse_xa else "parallel",   # decode: split N tiles across TCs
            "arbitrary")

    # VMEM footprint (double-buffered streamed tiles + scratch) -> limit.
    need = (2 * tm_eff * tk * itemsize                    # x
            + max(2, w_buffers) * tk * tn * itemsize      # W^T
            + 2 * 8 * tn * 4                              # bias
            + 2 * tk * max(rank, 128) * itemsize          # A
            + 2 * max(rank, 8) * tn * itemsize            # alpha*B
            + 2 * tm_eff * tn * out_itemsize              # out
            + tm_eff * tn * 4                             # acc scratch
            + tm_eff * max(rank, 128) * 4)                # x@A scratch
    vmem_limit = min(max(int(need * 1.5), 32 * 1024 * 1024), 48 * 1024 * 1024)

    flops = 2 * m * (in_dim * out_dim + in_dim * rank + rank * out_dim)
    bytes_accessed = (xm.size * itemsize
                      + wt.size * itemsize * n_row_tiles        # W re-streamed per row tile
                      + bias2d.size * 4
                      + a.size * itemsize * (1 if reuse_xa else grid[1])
                      + b.size * itemsize
                      + m_p * n_p * out_itemsize)

    w_spec_kwargs = {}
    if w_buffers > 2:
        # Deepen the pipeline on the only per-step streamed input if DMA-exposed.
        w_spec_kwargs["pipeline_mode"] = pl.Buffered(w_buffers)

    out = pl.pallas_call(
        functools.partial(_linear_with_lora_kernel, reuse_xa=reuse_xa),
        out_shape=jax.ShapeDtypeStruct((m_p, n_p), out_dtype),
        grid_spec=pltpu.PrefetchScalarGridSpec(
            num_scalar_prefetch=0,
            grid=grid,
            in_specs=[
                pl.BlockSpec((tm_eff, tk), lambda i, j, k: (i, k)),            # x
                pl.BlockSpec((tk, tn), lambda i, j, k: (k, j), **w_spec_kwargs),  # W^T
                pl.BlockSpec((1, tn), lambda i, j, k: (0, j)),                 # bias
                pl.BlockSpec((tk, rank), lambda i, j, k: (k, 0)),              # A
                pl.BlockSpec((rank, tn), lambda i, j, k: (0, j)),              # alpha*B
            ],
            out_specs=pl.BlockSpec((tm_eff, tn), lambda i, j, k: (i, j)),
            scratch_shapes=[
                pltpu.VMEM((tm_eff, tn), jnp.float32),     # base accumulator
                pltpu.VMEM((tm_eff, rank), jnp.float32),   # x @ A
            ],
        ),
        compiler_params=pltpu.CompilerParams(
            dimension_semantics=dims,
            vmem_limit_bytes=vmem_limit,
        ),
        cost_estimate=pl.CostEstimate(flops=flops, transcendentals=0,
                                      bytes_accessed=bytes_accessed),
    )(xm, wt, bias2d, a, b)

    out = out[:m, :out_dim]
    return out.reshape(*lead, out_dim)


def linear_with_lora(x, w, bias, a, b, alpha, *, compute_dtype=jnp.bfloat16,
                     tm=512, w_buffers=2):
    """One-shot convenience wrapper (prepares weights per call).

    For repeated calls, call prepare_linear_with_lora once and jit
    linear_with_lora_apply instead (avoids per-call W transpose/cast/pad).
    """
    out_dim = w.shape[0]
    prepared = prepare_linear_with_lora(w, bias, a, b, alpha,
                                        compute_dtype=compute_dtype)
    return linear_with_lora_apply(x, *prepared, out_dim=out_dim, tm=tm,
                                  w_buffers=w_buffers)


if __name__ == "__main__":
    # Small shapes consistent with the module's forward.
    batch, seq, in_dim, out_dim, rank = 2, 8, 32, 64, 8
    alpha = 16.0

    key = jax.random.PRNGKey(0)
    kx, kw, kb, ka, kB = jax.random.split(key, 5)

    x = jax.random.normal(kx, (batch, seq, in_dim), dtype=jnp.float32)

    # nn.Linear params (uniform like PyTorch's default init).
    lin_bound = 1.0 / math.sqrt(in_dim)
    w = jax.random.uniform(kw, (out_dim, in_dim), minval=-lin_bound,
                           maxval=lin_bound, dtype=jnp.float32)
    bias = jax.random.uniform(kb, (out_dim,), minval=-lin_bound,
                              maxval=lin_bound, dtype=jnp.float32)

    # LoRA A: kaiming_uniform_(a=sqrt(5)) -> bound = 1/sqrt(fan_in) = 1/sqrt(rank).
    a_bound = 1.0 / math.sqrt(rank)
    A = jax.random.uniform(ka, (in_dim, rank), minval=-a_bound,
                           maxval=a_bound, dtype=jnp.float32)
    # Module __init__ zero-inits B; use small random values so the LoRA matmul
    # path is actually exercised (forward semantics identical).
    B = 0.01 * jax.random.normal(kB, (rank, out_dim), dtype=jnp.float32)

    # Prepare the frozen/LoRA weights once; jit only the activation-sized path.
    prepared = prepare_linear_with_lora(w, bias, A, B, alpha,
                                        compute_dtype=jnp.bfloat16)
    fwd = jax.jit(functools.partial(linear_with_lora_apply, out_dim=out_dim))
    y = fwd(x, *prepared)
    y = jax.block_until_ready(y)
    assert y.shape == (batch, seq, out_dim)

    # Reference with the same bf16 operand rounding (f32 accumulation).
    hp = lax.Precision.HIGHEST

    def bf(v):
        return v.astype(jnp.bfloat16).astype(jnp.float32)

    xa_ref = jnp.einsum("bsk,kr->bsr", bf(x), bf(A), precision=hp)
    y_ref = (jnp.einsum("bsk,nk->bsn", bf(x), bf(w), precision=hp)
             + bias
             + jnp.einsum("bsr,rn->bsn", bf(xa_ref), bf(alpha * B), precision=hp))
    assert jnp.allclose(y, y_ref, atol=5e-3, rtol=5e-3), "mismatch vs bf16 reference"

    # Loose sanity check against the exact f32 math.
    y_f32 = x @ w.T + bias + alpha * ((x @ A) @ B)
    assert jnp.allclose(y, y_f32, atol=5e-2, rtol=5e-2), "mismatch vs f32 reference"

    print("KERNEL_OK")
</pallas_src>

<mosaic_0001>
module attributes {stable_mosaic.version = 11 : i64} {
  func.func @_linear_with_lora_kernel(%arg0: i32, %arg1: i32, %arg2: i32, %arg3: memref<16x32xbf16, #tpu.memory_space<vmem>>, %arg4: memref<32x128xbf16, #tpu.memory_space<vmem>>, %arg5: memref<1x128xf32, #tpu.memory_space<vmem>>, %arg6: memref<32x8xbf16, #tpu.memory_space<vmem>>, %arg7: memref<8x128xbf16, #tpu.memory_space<vmem>>, %arg8: memref<16x128xf32, #tpu.memory_space<vmem>>, %arg9: memref<16x128xf32, #tpu.memory_space<vmem>>, %arg10: memref<16x8xf32, #tpu.memory_space<vmem>>) attributes {dimension_semantics = [#tpu.dimension_semantics<parallel>, #tpu.dimension_semantics<parallel>, #tpu.dimension_semantics<arbitrary>], iteration_bounds = array<i64: 1, 1, 1>, scalar_prefetch = 0 : i64, scratch_operands = 2 : i64, tpu.core_type = #tpu.core_type<tc>, window_params = [{transform_indices = @transform_0, window_bounds = array<i64: 16, 32>}, {transform_indices = @transform_1, window_bounds = array<i64: 32, 128>}, {transform_indices = @transform_2, window_bounds = array<i64: 1, 128>}, {transform_indices = @transform_3, window_bounds = array<i64: 32, 8>}, {transform_indices = @transform_4, window_bounds = array<i64: 8, 128>}, {transform_indices = @transform_5, window_bounds = array<i64: 16, 128>}]} {
    %c0_i32 = arith.constant 0 : i32
    %0 = arith.cmpi eq, %arg2, %c0_i32 : i32
    %1 = arith.extui %0 : i1 to i32
    %c0_i32_0 = arith.constant 0 : i32
    %2 = arith.cmpi ne, %1, %c0_i32_0 : i32
    scf.if %2 {
      %cst_19 = arith.constant 0.000000e+00 : f32
      %20 = vector.broadcast %cst_19 : f32 to vector<16x128xf32>
      %c0_20 = arith.constant 0 : index
      %c0_21 = arith.constant 0 : index
      %21 = vector.load %arg9[%c0_20, %c0_21] : memref<16x128xf32, #tpu.memory_space<vmem>>, vector<16x128xf32>
      tpu.vector_store %arg9[%c0_20, %c0_21], %20 {strides = array<i32>} : memref<16x128xf32, #tpu.memory_space<vmem>>, vector<16x128xf32>,
    } else {
    }
    %c0 = arith.constant 0 : index
    %c0_1 = arith.constant 0 : index
    %3 = vector.load %arg3[%c0, %c0_1] : memref<16x32xbf16, #tpu.memory_space<vmem>>, vector<16x32xbf16>
    %c0_2 = arith.constant 0 : index
    %c0_3 = arith.constant 0 : index
    %4 = vector.load %arg9[%c0_2, %c0_3] : memref<16x128xf32, #tpu.memory_space<vmem>>, vector<16x128xf32>
    %c0_4 = arith.constant 0 : index
    %c0_5 = arith.constant 0 : index
    %5 = vector.load %arg4[%c0_4, %c0_5] : memref<32x128xbf16, #tpu.memory_space<vmem>>, vector<32x128xbf16>
    %cst = arith.constant dense<0.000000e+00> : vector<16x128xf32>
    %6 = tpu.matmul %3, %5, %cst {dimension_numbers = #tpu.dot_dimension_numbers<[1], [0], [0], [1], [0, 0, 1, 1], [], []>} : vector<16x32xbf16>, vector<32x128xbf16>, vector<16x128xf32> -> vector<16x128xf32>
    %7 = arith.addf %4, %6 : vector<16x128xf32>
    %c0_6 = arith.constant 0 : index
    %c0_7 = arith.constant 0 : index
    %8 = vector.load %arg9[%c0_6, %c0_7] : memref<16x128xf32, #tpu.memory_space<vmem>>, vector<16x128xf32>
    tpu.vector_store %arg9[%c0_6, %c0_7], %7 {strides = array<i32>} : memref<16x128xf32, #tpu.memory_space<vmem>>, vector<16x128xf32>,
    %c0_i32_8 = arith.constant 0 : i32
    %9 = arith.cmpi eq, %arg2, %c0_i32_8 : i32
    %10 = arith.extui %9 : i1 to i32
    %c0_i32_9 = arith.constant 0 : i32
    %11 = arith.cmpi ne, %10, %c0_i32_9 : i32
    scf.if %11 {
      %cst_19 = arith.constant 0.000000e+00 : f32
      %20 = vector.broadcast %cst_19 : f32 to vector<16x8xf32>
      %c0_20 = arith.constant 0 : index
      %c0_21 = arith.constant 0 : index
      %21 = vector.load %arg10[%c0_20, %c0_21] : memref<16x8xf32, #tpu.memory_space<vmem>>, vector<16x8xf32>
      tpu.vector_store %arg10[%c0_20, %c0_21], %20 {strides = array<i32>} : memref<16x8xf32, #tpu.memory_space<vmem>>, vector<16x8xf32>,
    } else {
    }
    %c0_10 = arith.constant 0 : index
    %c0_11 = arith.constant 0 : index
    %12 = vector.load %arg10[%c0_10, %c0_11] : memref<16x8xf32, #tpu.memory_space<vmem>>, vector<16x8xf32>
    %c0_12 = arith.constant 0 : index
    %c0_13 = arith.constant 0 : index
    %13 = vector.load %arg6[%c0_12, %c0_13] : memref<32x8xbf16, #tpu.memory_space<vmem>>, vector<32x8xbf16>
    %cst_14 = arith.constant dense<0.000000e+00> : vector<16x8xf32>
    %14 = tpu.matmul %3, %13, %cst_14 {dimension_numbers = #tpu.dot_dimension_numbers<[1], [0], [0], [1], [0, 0, 1, 1], [], []>} : vector<16x32xbf16>, vector<32x8xbf16>, vector<16x8xf32> -> vector<16x8xf32>
    %15 = arith.addf %12, %14 : vector<16x8xf32>
    %c0_15 = arith.constant 0 : index
    %c0_16 = arith.constant 0 : index
    %16 = vector.load %arg10[%c0_15, %c0_16] : memref<16x8xf32, #tpu.memory_space<vmem>>, vector<16x8xf32>
    tpu.vector_store %arg10[%c0_15, %c0_16], %15 {strides = array<i32>} : memref<16x8xf32, #tpu.memory_space<vmem>>, vector<16x8xf32>,
    %c0_i32_17 = arith.constant 0 : i32
    %17 = arith.cmpi eq, %arg2, %c0_i32_17 : i32
    %18 = arith.extui %17 : i1 to i32
    %c0_i32_18 = arith.constant 0 : i32
    %19 = arith.cmpi ne, %18, %c0_i32_18 : i32
    scf.if %19 {
      %c0_19 = arith.constant 0 : index
      %c0_20 = arith.constant 0 : index
      %20 = vector.load %arg10[%c0_19, %c0_20] : memref<16x8xf32, #tpu.memory_space<vmem>>, vector<16x8xf32>
      %21 = arith.truncf %20 : vector<16x8xf32> to vector<16x8xbf16>
      %c0_21 = arith.constant 0 : index
      %c0_22 = arith.constant 0 : index
      %22 = vector.load %arg7[%c0_21, %c0_22] : memref<8x128xbf16, #tpu.memory_space<vmem>>, vector<8x128xbf16>
      %cst_23 = arith.constant dense<0.000000e+00> : vector<16x128xf32>
      %23 = tpu.matmul %21, %22, %cst_23 {dimension_numbers = #tpu.dot_dimension_numbers<[1], [0], [0], [1], [0, 0, 1, 1], [], []>} : vector<16x8xbf16>, vector<8x128xbf16>, vector<16x128xf32> -> vector<16x128xf32>
      %c0_24 = arith.constant 0 : index
      %c0_25 = arith.constant 0 : index
      %24 = vector.load %arg9[%c0_24, %c0_25] : memref<16x128xf32, #tpu.memory_space<vmem>>, vector<16x128xf32>
      %c0_26 = arith.constant 0 : index
      %c0_27 = arith.constant 0 : index
      %25 = vector.load %arg5[%c0_26, %c0_27] : memref<1x128xf32, #tpu.memory_space<vmem>>, vector<1x128xf32>
      %26 = vector.broadcast %25 : vector<1x128xf32> to vector<16x128xf32>
      %27 = arith.addf %24, %26 : vector<16x128xf32>
      %28 = arith.addf %27, %23 : vector<16x128xf32>
      %c0_28 = arith.constant 0 : index
      %c0_29 = arith.constant 0 : index
      %29 = vector.load %arg8[%c0_28, %c0_29] : memref<16x128xf32, #tpu.memory_space<vmem>>, vector<16x128xf32>
      tpu.vector_store %arg8[%c0_28, %c0_29], %28 {strides = array<i32>} : memref<16x128xf32, #tpu.memory_space<vmem>>, vector<16x128xf32>,
    } else {
    }
    return
  }
  func.func @transform_0(%arg0: i32, %arg1: i32, %arg2: i32) -> (i32, i32) {
    %c0_i32 = arith.constant 0 : i32
    return %arg0, %arg2 : i32, i32
  }
  func.func @transform_1(%arg0: i32, %arg1: i32, %arg2: i32) -> (i32, i32) {
    %c0_i32 = arith.constant 0 : i32
    return %arg2, %arg1 : i32, i32
  }
  func.func @transform_2(%arg0: i32, %arg1: i32, %arg2: i32) -> (i32, i32) {
    %c0_i32 = arith.constant 0 : i32
    %c0_i32_0 = arith.constant 0 : i32
    return %c0_i32, %arg1 : i32, i32
  }
  func.func @transform_3(%arg0: i32, %arg1: i32, %arg2: i32) -> (i32, i32) {
    %c0_i32 = arith.constant 0 : i32
    %c0_i32_0 = arith.constant 0 : i32
    return %arg2, %c0_i32 : i32, i32
  }
  func.func @transform_4(%arg0: i32, %arg1: i32, %arg2: i32) -> (i32, i32) {
    %c0_i32 = arith.constant 0 : i32
    %c0_i32_0 = arith.constant 0 : i32
    return %c0_i32, %arg1 : i32, i32
  }
  func.func @transform_5(%arg0: i32, %arg1: i32, %arg2: i32) -> (i32, i32) {
    %c0_i32 = arith.constant 0 : i32
    return %arg0, %arg1 : i32, i32
  }
}

</mosaic_0001>

<bundles_post_ra>
// kernel: linear_with_lora_apply.1
= control target key start
LH: loop header
LB: loop body
LE: loop exit
PB: predicated region body
PF: predicated region fallthrough
CT: control target
= control target key end

     0   :  { %vm77_vm0 = vcmask 64512   ;;  %v191_v1 = vmov 0.0   ;;  %vm52_vm1 = vcmask 261120   ;;  %vm127_vm2 = vcmask 1043456   ;;  %s254_s3 = inlined_call_operand.vmem [shape: bf16[32,8], index: 3, kind: input, shape index: {}]   ;;  %s255_s0 = inlined_call_operand.vmem [shape: bf16[16,32], index: 0, kind: input, shape index: {}]   ;;  %s256_s2 = inlined_call_operand.vmem [shape: f32[1,128], index: 2, kind: input, shape index: {}]   ;;  %s257_s1 = inlined_call_operand.vmem [shape: bf16[32,128], index: 1, kind: input, shape index: {}]   ;;  %s258_s4 = inlined_call_operand.vmem [shape: bf16[8,128], index: 4, kind: input, shape index: {}]   ;;  %s259_s5 = inlined_call_operand.vmem [shape: f32[16,128], index: 5, kind: output, shape index: {}]  }
   0x1   :  { %v188_v0 = vld [vmem:[%s254_s3 + $0x8] sm:$0xff]  ;;  %78 = vst.msk [vmem:[#allocation3] sm:$0xff] %vm77_vm0, %v191_v1  ;;  %v187_v2 = vld [vmem:[%s254_s3] sm:$0xff] }
   0x2   :  { %79 = vst.msk [vmem:[#allocation3 + $0x8] sm:$0xff] %vm77_vm0, %v191_v1  ;;  %104 = vmatpush.bf16.msra.mxu1 %v188_v0  ;;  %v184_v3 = vld [vmem:[%s255_s0] sm:$0xff]  ;;  %v186_v4 = vld [vmem:[%s257_s1 + $0x8] sm:$0xff] }
   0x3   :  { %62 = vmatpush.bf16.msra.mxu0 %v186_v4  ;;  %v185_v5 = vld [vmem:[%s257_s1] sm:$0xff] }
   0x4   :  { %v123_v6 = vld [vmem:[%s258_s4] sm:$0xf] }
   0x5   :  { %v129_v7 = vsel %vm127_vm2, %v123_v6, 0  ;;  %v190_v17 = vld [vmem:[%s256_s2] ss:$0 sm:$0xff] }
   0x6   :  { %105 = vmatpush.bf16.msra.mxu1 %v187_v2  ;;  %138 = vmatpush.bf16.msra.mxu2 %v129_v7 }
   0x7   :  { %63 = vmatpush.bf16.msra.mxu0 %v185_v5 }
   0x8   :  { %v80_v8 = vld [vmem:[#allocation3] sm:$0xff] }
   0x9   :  { %182 = vmatmul.msk.bf16.vlgmr.msra.gmra.mxu1 %vm52_vm1, %v184_v3  ;;  %v81_v11 = vld [vmem:[#allocation3 + $0x8] sm:$0xff] }
   0xa   :  { %173 = vmatmul.msk.bf16.vlgmr.msra.gmra.mxu0 %vm52_vm1, %v184_v3 }
  0x86   :  { %v107_v9 = vpop.f32.mrf.mxu1 }
  0x87   :  { %v112_v10 = vadd.f32 %v107_v9, %v80_v8  ;;  %v65_v18 = vpop.f32.mrf.mxu0 }
  0x88   :  { %v151_v19 = vadd.f32 %v190_v17, %v65_v18 }
  0x89   :  { %115 = vst.msk [vmem:[#allocation3] sm:$0xff] %vm77_vm0, %v112_v10 }
  0x8e   :  { %v109_v12 = vpop.f32.mrf.mxu1 }
  0x8f   :  { %v113_v13 = vadd.f32 %v109_v12, %v81_v11  ;;  %v67_v22 = vpop.f32.mrf.mxu0 }
  0x90   :  { %v120_v14 = vld [vmem:[#allocation3] sm:$0xff]  ;;  %v152_v23 = vadd.f32 %v190_v17, %v67_v22 }
  0x91   :  { %116 = vst.msk [vmem:[#allocation3 + $0x8] sm:$0xff] %vm77_vm0, %v113_v13 }
  0x98   :  { %v121_v15 = vld [vmem:[#allocation3 + $0x8] sm:$0xff] }
  0x99   :  { %v122_v16 = vpack.c.bf16 %v121_v15, %v120_v14 }
  0x9b   :  { %183 = vmatmul.msk.bf16.vlgmr.msra.gmra.mxu2 %vm77_vm0, %v122_v16 }
 0x11e   :  { %v140_v20 = vpop.f32.mrf.mxu2 }
 0x11f   :  { %v153_v21 = vadd.f32 %v151_v19, %v140_v20 }
 0x121   :  { %155 = vst [vmem:[%s259_s5] sm:$0xff] %v153_v21 }
 0x126   :  { %v142_v24 = vpop.f32.mrf.mxu2 }
 0x127   :  { %v154_v25 = vadd.f32 %v152_v23, %v142_v24 }
 0x129   :  { %156 = vst [vmem:[%s259_s5 + $0x8] sm:$0xff] %v154_v25 }

</bundles_post_ra>
